<compile_context>
chip_gen: v7x
topology: tpu7x:2x2x1
jax: 0.10.0
libtpu: 0.0.40
codegen_flags: <defaults>
</compile_context>

<pallas_src>
import jax
import jax.numpy as jnp
from jax.experimental import pallas as pl
from jax.experimental.pallas import tpu as pltpu


def _round_up(x, m):
    return (x + m - 1) // m * m


def make_mlp_kernel(P1, P2, Pout):
    def mlp_kernel(x_ref, w1_ref, w2_ref, w3_ref, b_ref, o_ref):
        # Fused biases: [b1 | b2 | b3], each padded to its 128-multiple width.
        # b3's padded lanes hold -1e30, which masks the softmax padding.
        b1 = b_ref[:, 0:P1]
        b2 = b_ref[:, P1:P1 + P2]
        b3 = b_ref[:, P1 + P2:P1 + P2 + Pout]

        # Layer 1: bf16 matmul, f32 accumulate, bias + ReLU in f32.
        h1 = jnp.dot(x_ref[...], w1_ref[...],
                     preferred_element_type=jnp.float32)
        h1 = jnp.maximum(h1 + b1, 0.0)

        # Layer 2.
        h2 = jnp.dot(h1.astype(jnp.bfloat16), w2_ref[...],
                     preferred_element_type=jnp.float32)
        h2 = jnp.maximum(h2 + b2, 0.0)

        # Layer 3 + softmax over features (dim=1 of the 2-D input).
        logits = jnp.dot(h2.astype(jnp.bfloat16), w3_ref[...],
                         preferred_element_type=jnp.float32) + b3

        m = jnp.max(logits, axis=-1, keepdims=True)
        e = jnp.exp(logits - m)
        denom = jnp.sum(e, axis=-1, keepdims=True)
        o_ref[...] = (e * pl.reciprocal(denom, approx=True)).astype(o_ref.dtype)

    return mlp_kernel


def mlp_forward(x, w1, b1, w2, b2, w3, b3):
    batch, in_dim = x.shape
    K1 = w1.shape[1]
    K2 = w2.shape[1]
    out_dim = w3.shape[1]

    # Lane-dense padded dims (multiples of 128).
    Pin = _round_up(in_dim, 128)
    P1 = _round_up(K1, 128)
    P2 = _round_up(K2, 128)
    Pout = _round_up(out_dim, 128)

    # Batch tiling: single step for small batch, 512-row tiles otherwise.
    if batch <= 512:
        TM = _round_up(batch, 8)
        PB = TM
    else:
        TM = 512
        PB = _round_up(batch, TM)

    # Pad + cast matmul operands to bf16 (f32 accumulation inside the kernel).
    xp = jnp.pad(x, ((0, PB - batch), (0, Pin - in_dim))).astype(jnp.bfloat16)
    w1p = jnp.pad(w1, ((0, Pin - in_dim), (0, P1 - K1))).astype(jnp.bfloat16)
    w2p = jnp.pad(w2, ((0, P1 - K1), (0, P2 - K2))).astype(jnp.bfloat16)
    w3p = jnp.pad(w3, ((0, P2 - K2), (0, Pout - out_dim))).astype(jnp.bfloat16)

    # One fused, lane-dense f32 bias ref: [b1 | b2 | b3].
    # b3's lane padding is filled with -1e30 so padded softmax columns vanish
    # (padded W3 columns contribute exactly 0 to the logits).
    neg_big = jnp.float32(-1e30)
    bcat = jnp.concatenate([
        jnp.pad(b1.reshape(1, -1).astype(jnp.float32),
                ((0, 0), (0, P1 - K1))),
        jnp.pad(b2.reshape(1, -1).astype(jnp.float32),
                ((0, 0), (0, P2 - K2))),
        jnp.pad(b3.reshape(1, -1).astype(jnp.float32),
                ((0, 0), (0, Pout - out_dim)), constant_values=neg_big),
    ], axis=1)

    kernel = make_mlp_kernel(P1, P2, Pout)

    flops = 2 * batch * (in_dim * K1 + K1 * K2 + K2 * out_dim)
    bytes_accessed = (xp.size * 2 + w1p.size * 2 + w2p.size * 2
                      + w3p.size * 2 + bcat.size * 4 + PB * Pout * 4)
    cost = pl.CostEstimate(flops=flops,
                           transcendentals=batch * out_dim,
                           bytes_accessed=bytes_accessed)

    out = pl.pallas_call(
        kernel,
        out_shape=jax.ShapeDtypeStruct((PB, Pout), jnp.float32),
        grid=(PB // TM,),
        in_specs=[
            pl.BlockSpec((TM, Pin), lambda i: (i, 0)),            # x tile
            pl.BlockSpec((Pin, P1), lambda i: (0, 0)),            # W1 resident
            pl.BlockSpec((P1, P2), lambda i: (0, 0)),             # W2 resident
            pl.BlockSpec((P2, Pout), lambda i: (0, 0)),           # W3 resident
            pl.BlockSpec((1, P1 + P2 + Pout), lambda i: (0, 0)),  # fused biases
        ],
        out_specs=pl.BlockSpec((TM, Pout), lambda i: (i, 0)),
        compiler_params=pltpu.CompilerParams(
            dimension_semantics=("parallel",)),
        cost_estimate=cost,
    )(xp, w1p, w2p, w3p, bcat)

    return out[:batch, :out_dim]


def init_linear(key, in_dim, out_dim):
    """nn.Linear-style init: U(-1/sqrt(in), 1/sqrt(in)).

    Weight returned pre-transposed as (in_dim, out_dim), bias as (out_dim,).
    """
    kw, kb = jax.random.split(key)
    bound = 1.0 / jnp.sqrt(jnp.float32(in_dim))
    w = jax.random.uniform(kw, (in_dim, out_dim), jnp.float32, -bound, bound)
    b = jax.random.uniform(kb, (out_dim,), jnp.float32, -bound, bound)
    return w, b


if __name__ == "__main__":
    # Small shapes consistent with Model(input_dim, output_dim, K1, K2).
    batch, input_dim, K1, K2, output_dim = 8, 32, 64, 32, 16

    key = jax.random.PRNGKey(0)
    kx, k1, k2, k3 = jax.random.split(key, 4)

    x = jax.random.normal(kx, (batch, input_dim), jnp.float32)
    w1, b1 = init_linear(k1, input_dim, K1)
    w2, b2 = init_linear(k2, K1, K2)
    w3, b3 = init_linear(k3, K2, output_dim)

    out = mlp_forward(x, w1, b1, w2, b2, w3, b3)
    out = jax.block_until_ready(out)

    # Pure-JAX f32 reference. Tolerances loosened because the kernel uses
    # bf16 MXU inputs (f32 accumulation) and an approximate EUP reciprocal.
    h1 = jnp.maximum(x @ w1 + b1[None, :], 0.0)
    h2 = jnp.maximum(h1 @ w2 + b2[None, :], 0.0)
    ref = jax.nn.softmax(h2 @ w3 + b3[None, :], axis=1)

    assert out.shape == (batch, output_dim)
    assert bool(jnp.all(jnp.isfinite(out)))
    assert jnp.allclose(out, ref, atol=2e-2, rtol=2e-2)
    assert jnp.allclose(jnp.sum(out, axis=1), 1.0, atol=5e-3)

    print("KERNEL_OK")
</pallas_src>

<mosaic_0001>
module attributes {stable_mosaic.version = 11 : i64} {
  func.func @mlp_kernel(%arg0: i32, %arg1: memref<8x128xbf16, #tpu.memory_space<vmem>>, %arg2: memref<128x128xbf16, #tpu.memory_space<vmem>>, %arg3: memref<128x128xbf16, #tpu.memory_space<vmem>>, %arg4: memref<128x128xbf16, #tpu.memory_space<vmem>>, %arg5: memref<1x384xf32, #tpu.memory_space<vmem>>, %arg6: memref<8x128xf32, #tpu.memory_space<vmem>>) attributes {dimension_semantics = [#tpu.dimension_semantics<parallel>], iteration_bounds = array<i64: 1>, scalar_prefetch = 0 : i64, scratch_operands = 0 : i64, tpu.core_type = #tpu.core_type<tc>, window_params = [{transform_indices = @transform_0, window_bounds = array<i64: 8, 128>}, {pipeline_mode = #tpu.pipeline_mode<synchronous>, transform_indices = @transform_1, window_bounds = array<i64: 128, 128>}, {pipeline_mode = #tpu.pipeline_mode<synchronous>, transform_indices = @transform_2, window_bounds = array<i64: 128, 128>}, {pipeline_mode = #tpu.pipeline_mode<synchronous>, transform_indices = @transform_3, window_bounds = array<i64: 128, 128>}, {pipeline_mode = #tpu.pipeline_mode<synchronous>, transform_indices = @transform_4, window_bounds = array<i64: 1, 384>}, {transform_indices = @transform_5, window_bounds = array<i64: 8, 128>}]} {
    %c0 = arith.constant 0 : index
    %c0_0 = arith.constant 0 : index
    %0 = vector.load %arg5[%c0, %c0_0] : memref<1x384xf32, #tpu.memory_space<vmem>>, vector<1x128xf32>
    %c0_1 = arith.constant 0 : index
    %c128 = arith.constant 128 : index
    %1 = vector.load %arg5[%c0_1, %c128] : memref<1x384xf32, #tpu.memory_space<vmem>>, vector<1x128xf32>
    %c0_2 = arith.constant 0 : index
    %c256 = arith.constant 256 : index
    %2 = vector.load %arg5[%c0_2, %c256] : memref<1x384xf32, #tpu.memory_space<vmem>>, vector<1x128xf32>
    %c0_3 = arith.constant 0 : index
    %c0_4 = arith.constant 0 : index
    %3 = vector.load %arg1[%c0_3, %c0_4] : memref<8x128xbf16, #tpu.memory_space<vmem>>, vector<8x128xbf16>
    %c0_5 = arith.constant 0 : index
    %c0_6 = arith.constant 0 : index
    %4 = vector.load %arg2[%c0_5, %c0_6] : memref<128x128xbf16, #tpu.memory_space<vmem>>, vector<128x128xbf16>
    %cst = arith.constant dense<0.000000e+00> : vector<8x128xf32>
    %5 = tpu.matmul %3, %4, %cst {dimension_numbers = #tpu.dot_dimension_numbers<[1], [0], [0], [1], [0, 0, 1, 1], [], []>} : vector<8x128xbf16>, vector<128x128xbf16>, vector<8x128xf32> -> vector<8x128xf32>
    %6 = vector.broadcast %0 : vector<1x128xf32> to vector<8x128xf32>
    %7 = arith.addf %5, %6 : vector<8x128xf32>
    %cst_7 = arith.constant 0.000000e+00 : f32
    %8 = vector.broadcast %cst_7 : f32 to vector<8x128xf32>
    %9 = arith.maximumf %7, %8 : vector<8x128xf32>
    %10 = arith.truncf %9 : vector<8x128xf32> to vector<8x128xbf16>
    %c0_8 = arith.constant 0 : index
    %c0_9 = arith.constant 0 : index
    %11 = vector.load %arg3[%c0_8, %c0_9] : memref<128x128xbf16, #tpu.memory_space<vmem>>, vector<128x128xbf16>
    %cst_10 = arith.constant dense<0.000000e+00> : vector<8x128xf32>
    %12 = tpu.matmul %10, %11, %cst_10 {dimension_numbers = #tpu.dot_dimension_numbers<[1], [0], [0], [1], [0, 0, 1, 1], [], []>} : vector<8x128xbf16>, vector<128x128xbf16>, vector<8x128xf32> -> vector<8x128xf32>
    %13 = vector.broadcast %1 : vector<1x128xf32> to vector<8x128xf32>
    %14 = arith.addf %12, %13 : vector<8x128xf32>
    %cst_11 = arith.constant 0.000000e+00 : f32
    %15 = vector.broadcast %cst_11 : f32 to vector<8x128xf32>
    %16 = arith.maximumf %14, %15 : vector<8x128xf32>
    %17 = arith.truncf %16 : vector<8x128xf32> to vector<8x128xbf16>
    %c0_12 = arith.constant 0 : index
    %c0_13 = arith.constant 0 : index
    %18 = vector.load %arg4[%c0_12, %c0_13] : memref<128x128xbf16, #tpu.memory_space<vmem>>, vector<128x128xbf16>
    %cst_14 = arith.constant dense<0.000000e+00> : vector<8x128xf32>
    %19 = tpu.matmul %17, %18, %cst_14 {dimension_numbers = #tpu.dot_dimension_numbers<[1], [0], [0], [1], [0, 0, 1, 1], [], []>} : vector<8x128xbf16>, vector<128x128xbf16>, vector<8x128xf32> -> vector<8x128xf32>
    %20 = vector.broadcast %2 : vector<1x128xf32> to vector<8x128xf32>
    %21 = arith.addf %19, %20 : vector<8x128xf32>
    %cst_15 = arith.constant dense<0xFF800000> : vector<8xf32>
    %22 = vector.multi_reduction <maximumf>, %21, %cst_15 [1] : vector<8x128xf32> to vector<8xf32>
    %23 = vector.shape_cast %22 : vector<8xf32> to vector<8x1xf32>
    %24 = vector.broadcast %23 : vector<8x1xf32> to vector<8x128xf32>
    %25 = arith.subf %21, %24 : vector<8x128xf32>
    %26 = math.exp %25 : vector<8x128xf32>
    %cst_16 = arith.constant dense<0.000000e+00> : vector<8xf32>
    %27 = vector.multi_reduction <add>, %26, %cst_16 [1] : vector<8x128xf32> to vector<8xf32>
    %28 = vector.shape_cast %27 : vector<8xf32> to vector<8x1xf32>
    %29 = tpu.reciprocal %28 {approx = true} : vector<8x1xf32> -> vector<8x1xf32>
    %30 = vector.broadcast %29 : vector<8x1xf32> to vector<8x128xf32>
    %31 = arith.mulf %26, %30 : vector<8x128xf32>
    %c0_17 = arith.constant 0 : index
    %c0_18 = arith.constant 0 : index
    %32 = vector.load %arg6[%c0_17, %c0_18] : memref<8x128xf32, #tpu.memory_space<vmem>>, vector<8x128xf32>
    tpu.vector_store %arg6[%c0_17, %c0_18], %31 {strides = array<i32>} : memref<8x128xf32, #tpu.memory_space<vmem>>, vector<8x128xf32>,
    return
  }
  func.func @transform_0(%arg0: i32) -> (i32, i32) {
    %c0_i32 = arith.constant 0 : i32
    %c0_i32_0 = arith.constant 0 : i32
    return %arg0, %c0_i32 : i32, i32
  }
  func.func @transform_1(%arg0: i32) -> (i32, i32) {
    %c0_i32 = arith.constant 0 : i32
    %c0_i32_0 = arith.constant 0 : i32
    %c0_i32_1 = arith.constant 0 : i32
    return %c0_i32, %c0_i32_0 : i32, i32
  }
  func.func @transform_2(%arg0: i32) -> (i32, i32) {
    %c0_i32 = arith.constant 0 : i32
    %c0_i32_0 = arith.constant 0 : i32
    %c0_i32_1 = arith.constant 0 : i32
    return %c0_i32, %c0_i32_0 : i32, i32
  }
  func.func @transform_3(%arg0: i32) -> (i32, i32) {
    %c0_i32 = arith.constant 0 : i32
    %c0_i32_0 = arith.constant 0 : i32
    %c0_i32_1 = arith.constant 0 : i32
    return %c0_i32, %c0_i32_0 : i32, i32
  }
  func.func @transform_4(%arg0: i32) -> (i32, i32) {
    %c0_i32 = arith.constant 0 : i32
    %c0_i32_0 = arith.constant 0 : i32
    %c0_i32_1 = arith.constant 0 : i32
    return %c0_i32, %c0_i32_0 : i32, i32
  }
  func.func @transform_5(%arg0: i32) -> (i32, i32) {
    %c0_i32 = arith.constant 0 : i32
    %c0_i32_0 = arith.constant 0 : i32
    return %arg0, %c0_i32 : i32, i32
  }
}

</mosaic_0001>

<bundles_post_ra>
// kernel: tpu_custom_call.1
= control target key start
LH: loop header
LB: loop body
LE: loop exit
PB: predicated region body
PF: predicated region fallthrough
CT: control target
= control target key end

     0   :  { %10 = vsyncpa [#allocation3], 0  ;;  %s856_s0 = inlined_call_operand.hbm [shape: bf16[8,128], index: 0, kind: input, shape index: {}]   ;;  %s857_s1 = inlined_call_operand.hbm [shape: bf16[128,128], index: 1, kind: input, shape index: {}]   ;;  %s858_s2 = inlined_call_operand.hbm [shape: bf16[128,128], index: 2, kind: input, shape index: {}]   ;;  %s859_s3 = inlined_call_operand.hbm [shape: bf16[128,128], index: 3, kind: input, shape index: {}]   ;;  %s860_s4 = inlined_call_operand.vmem [shape: f32[1,384], index: 4, kind: input, shape index: {}]   ;;  %s861_s5 = inlined_call_operand.hbm [shape: f32[8,128], index: 5, kind: output, shape index: {}]  }
   0x1   :  { %11 = vsyncpa [#allocation6], 0 }
   0x2   :  { %12 = vsyncpa [#allocation9], 0 }
   0x3   :  { %13 = vsyncpa [#allocation4], 0  ;;  %s709_s18 = smov [#allocation5]   ;;  %s591_s22 = scalar_lea.hbm %s857_s1, 1024 }
   0x4   :  { %s29_s19 = sshll.u32 %s709_s18, 4  ;;  %p592_p0 = scmp.ne.s32.totalorder %s857_s1, %s591_s22  ;;  %s30_s19 = int_to_ptr.vmem [resolvable:$true] %s29_s19 }
   0x5   :  { %p595_p1 = scmp.lt.u32.totalorder %s591_s22, %s857_s1 }
   0x7   :  { %p597_p2 = pnand %p595_p1, %p592_p0 }
   0x9   :  { %600 = shalt.err (!%p597_p2)
}
   0xa   :  { %s601_s27 = scalar_lea.vmem %s30_s19, 1024  ;;  %p606_p4 = scmp.lt.s32.totalorder %s30_s19, %s30_s19 }
   0xb   :  { %p602_p3 = scmp.ne.s32.totalorder %s30_s19, %s601_s27  ;;  %p607_p5 = scmp.lt.s32.totalorder %s601_s27, %s601_s27 }
   0xd   :  { %p608_p6 = por %p607_p5, %p606_p4 }
   0xf   :  { %p609_p7 = pnand %p608_p6, %p602_p3 }
  0x11   :  { %612 = shalt.err (!%p609_p7)
}
  0x12   :  { %s710_s28 = smov 64   ;;  %s711_s29 = smov 4  }
  0x13   :  { %35 = dma.hbm_to_vmem [thread:$0]  %s857_s1, 1024, %s30_s19, [#allocation6], %s710_s28, %s710_s28, %s711_s29  }
  0x14   :  { %s712_s7 = smov [#allocation2]   ;;  %s713_s9 = smov [#allocation7]  }
  0x15   :  { %s20_s8 = sshll.u32 %s712_s7, 4  ;;  %s41_s10 = sshll.u32 %s713_s9, 4  ;;  %s21_s8 = int_to_ptr.vmem [resolvable:$true] %s20_s8  ;;  %s42_s10 = int_to_ptr.vmem [resolvable:$true] %s41_s10 }
  0x16   :  { %s613_s13 = scalar_lea.hbm %s856_s0, 64 }
  0x17   :  { %p614_p8 = scmp.ne.s32.totalorder %s856_s0, %s613_s13  ;;  %p617_p9 = scmp.lt.u32.totalorder %s613_s13, %s856_s0 }
  0x19   :  { %p619_p10 = pnand %p617_p9, %p614_p8 }
  0x1b   :  { %622 = shalt.err (!%p619_p10)
}
  0x1c   :  { %s623_s1 = scalar_lea.vmem %s21_s8, 64  ;;  %p628_p12 = scmp.lt.s32.totalorder %s21_s8, %s21_s8 }
  0x1d   :  { %p624_p11 = scmp.ne.s32.totalorder %s21_s8, %s623_s1  ;;  %p629_p13 = scmp.lt.s32.totalorder %s623_s1, %s623_s1 }
  0x1f   :  { %p630_p0 = por %p629_p13, %p628_p12 }
  0x21   :  { %p631_p1 = pnand %p630_p0, %p624_p11 }
  0x23   :  { %634 = shalt.err (!%p631_p1)
}
  0x24   :  { %23 = dma.hbm_to_vmem [thread:$0]  %s856_s0, 64, %s21_s8, [#allocation3]  }
  0x25   :  { %s635_s22 = scalar_lea.hbm %s858_s2, 1024 }
  0x26   :  { %p636_p2 = scmp.ne.s32.totalorder %s858_s2, %s635_s22  ;;  %p639_p3 = scmp.lt.u32.totalorder %s635_s22, %s858_s2 }
  0x28   :  { %p641_p4 = pnand %p639_p3, %p636_p2 }
  0x2a   :  { %644 = shalt.err (!%p641_p4)
}
  0x2b   :  { %s645_s27 = scalar_lea.vmem %s42_s10, 1024  ;;  %p650_p6 = scmp.lt.s32.totalorder %s42_s10, %s42_s10 }
  0x2c   :  { %p646_p5 = scmp.ne.s32.totalorder %s42_s10, %s645_s27  ;;  %p651_p7 = scmp.lt.s32.totalorder %s645_s27, %s645_s27 }
  0x2e   :  { %p652_p8 = por %p651_p7, %p650_p6 }
  0x30   :  { %p653_p9 = pnand %p652_p8, %p646_p5 }
  0x32   :  { %656 = shalt.err (!%p653_p9)
}
  0x33   :  { %47 = dma.hbm_to_vmem [thread:$0]  %s858_s2, 1024, %s42_s10, [#allocation6], %s710_s28, %s710_s28, %s711_s29  }
  0x34   :  { %s714_s6 = smov [#allocation8]   ;;  %s657_s11 = scalar_lea.hbm %s859_s3, 1024 }
  0x35   :  { %s53_s7 = sshll.u32 %s714_s6, 4  ;;  %p658_p10 = scmp.ne.s32.totalorder %s859_s3, %s657_s11  ;;  %s54_s7 = int_to_ptr.vmem [resolvable:$true] %s53_s7 }
  0x36   :  { %p661_p11 = scmp.lt.u32.totalorder %s657_s11, %s859_s3 }
  0x38   :  { %p663_p12 = pnand %p661_p11, %p658_p10 }
  0x3a   :  { %666 = shalt.err (!%p663_p12)
}
  0x3b   :  { %s667_s16 = scalar_lea.vmem %s54_s7, 1024  ;;  %p672_p0 = scmp.lt.s32.totalorder %s54_s7, %s54_s7 }
  0x3c   :  { %p668_p13 = scmp.ne.s32.totalorder %s54_s7, %s667_s16  ;;  %p673_p1 = scmp.lt.s32.totalorder %s667_s16, %s667_s16 }
  0x3e   :  { %p674_p2 = por %p673_p1, %p672_p0 }
  0x40   :  { %p675_p3 = pnand %p674_p2, %p668_p13 }
  0x42   :  { %678 = shalt.err (!%p675_p3)
}
  0x43   :  { %59 = dma.hbm_to_vmem [thread:$0]  %s859_s3, 1024, %s54_s7, [#allocation9], %s710_s28, %s710_s28, %s711_s29  }
  0x44   :  { %701 = dma.done.wait [#allocation3], 64  }
  0x45   :  { %702 = vsyncadd [#allocation3], 4294967232 }
  0x46   :  { %703 = dma.done.wait [#allocation6], 2048  }
  0x47   :  { %704 = vsyncadd [#allocation6], 4294965248 }
  0x48   :  { %705 = dma.done.wait [#allocation9], 1024  }
  0x49   :  { %706 = vsyncadd [#allocation9], 4294966272  ;;  %v715_v0 = vmov 0.0   ;;  %vm716_vm0 = vmmov 0   ;;  %v563_v1 = vld [vmem:[#allocation5] sm:$0xff]   ;;  %v564_v2 = vld [vmem:[#allocation5 + $0x8] sm:$0xff]  }
  0x4a   :  { %494 = vmatprep.subr.bf16.mxu0 %v715_v0  ;;  %510 = vmatprep.mubr.msk.bf16.mxu0 %vm716_vm0, %v715_v0  ;;  %v565_v3 = vld [vmem:[#allocation5 + $0x10] sm:$0xff]   ;;  %v571_v4 = vld [vmem:[#allocation7] sm:$0xff]   ;;  %v566_v5 = vld [vmem:[#allocation5 + $0x18] sm:$0xff]   ;;  %s717_s19 = smov [#allocation10]  }
  0x4b   :  { %514 = vmatprep.subr.bf16.mxu1 %v715_v0  ;;  %530 = vmatprep.mubr.msk.bf16.mxu1 %vm716_vm0, %v715_v0  ;;  %v572_v6 = vld [vmem:[#allocation7 + $0x8] sm:$0xff]   ;;  %v567_v7 = vld [vmem:[#allocation5 + $0x20] sm:$0xff]   ;;  %v573_v8 = vld [vmem:[#allocation7 + $0x10] sm:$0xff]   ;;  %s429_s20 = sshll.u32 %s717_s19, 4  ;;  %s430_s20 = int_to_ptr.vmem [resolvable:$true] %s429_s20 }
  0x4c   :  { %495 = vmatpush3.bf16.msra.mxu0 %v563_v1  ;;  %515 = vmatpush3.bf16.msra.mxu1 %v571_v4  ;;  %v568_v9 = vld [vmem:[#allocation5 + $0x28] sm:$0xff]   ;;  %v574_v10 = vld [vmem:[#allocation7 + $0x18] sm:$0xff]   ;;  %v569_v11 = vld [vmem:[#allocation5 + $0x30] sm:$0xff]   ;;  %p684_p5 = scmp.lt.s32.totalorder %s430_s20, %s430_s20 }
  0x4d   :  { %496 = vmatprep.subr.bf16.mxu0 %v715_v0  ;;  %516 = vmatprep.subr.bf16.mxu1 %v715_v0  ;;  %v575_v12 = vld [vmem:[#allocation7 + $0x20] sm:$0xff]   ;;  %v570_v13 = vld [vmem:[#allocation5 + $0x38] sm:$0xff]   ;;  %v576_v14 = vld [vmem:[#allocation7 + $0x28] sm:$0xff]  }
  0x4e   :  { %v78_v15 = vld [vmem:[#allocation2] sm:$0xf]  ;;  %v577_v16 = vld [vmem:[#allocation7 + $0x30] sm:$0xff]   ;;  %v579_v18 = vld [vmem:[#allocation8] sm:$0xff]  }
  0x4f   :  { %v578_v17 = vld [vmem:[#allocation7 + $0x38] sm:$0xff]   ;;  %v580_v19 = vld [vmem:[#allocation8 + $0x8] sm:$0xff]   ;;  %v581_v20 = vld [vmem:[#allocation8 + $0x10] sm:$0xff]  }
  0x50   :  { %497 = vmatpush3.bf16.msra.mxu0 %v564_v2  ;;  %517 = vmatpush3.bf16.msra.mxu1 %v572_v6  ;;  %v582_v21 = vld [vmem:[#allocation8 + $0x18] sm:$0xff]   ;;  %v583_v22 = vld [vmem:[#allocation8 + $0x20] sm:$0xff]   ;;  %v584_v23 = vld [vmem:[#allocation8 + $0x28] sm:$0xff]  }
  0x51   :  { %498 = vmatprep.subr.bf16.mxu0 %v715_v0  ;;  %518 = vmatprep.subr.bf16.mxu1 %v715_v0  ;;  %v440_v24 = vld [vmem:[%s860_s4] ss:$0 sm:$0xff]  ;;  %v585_v32 = vld [vmem:[#allocation8 + $0x30] sm:$0xff]   ;;  %v449_v34 = vld [vmem:[%s860_s4 + $0x1] ss:$0 sm:$0xff] }
  0x52   :  { %v586_v33 = vld [vmem:[#allocation8 + $0x38] sm:$0xff]  }
  0x53   :  { %v458_v42 = vld [vmem:[%s860_s4 + $0x2] ss:$0 sm:$0xff]  ;;  %s679_s4 = scalar_lea.vmem %s430_s20, 128 }
  0x54   :  { %499 = vmatpush3.bf16.msra.mxu0 %v565_v3  ;;  %519 = vmatpush3.bf16.msra.mxu1 %v573_v8  ;;  %p680_p4 = scmp.ne.s32.totalorder %s430_s20, %s679_s4  ;;  %p685_p6 = scmp.lt.s32.totalorder %s679_s4, %s679_s4 }
  0x55   :  { %500 = vmatprep.subr.bf16.mxu0 %v715_v0  ;;  %520 = vmatprep.subr.bf16.mxu1 %v715_v0 }
  0x56   :  { %p686_p7 = por %p685_p6, %p684_p5 }
  0x58   :  { %501 = vmatpush3.bf16.msra.mxu0 %v566_v5  ;;  %521 = vmatpush3.bf16.msra.mxu1 %v574_v10  ;;  %p687_p8 = pnand %p686_p7, %p680_p4 }
  0x59   :  { %502 = vmatprep.subr.bf16.mxu0 %v715_v0  ;;  %522 = vmatprep.subr.bf16.mxu1 %v715_v0 }
  0x5c   :  { %503 = vmatpush3.bf16.msra.mxu0 %v567_v7  ;;  %523 = vmatpush3.bf16.msra.mxu1 %v575_v12 }
  0x5d   :  { %504 = vmatprep.subr.bf16.mxu0 %v715_v0  ;;  %524 = vmatprep.subr.bf16.mxu1 %v715_v0 }
  0x60   :  { %505 = vmatpush3.bf16.msra.mxu0 %v568_v9  ;;  %525 = vmatpush3.bf16.msra.mxu1 %v576_v14 }
  0x61   :  { %506 = vmatprep.subr.bf16.mxu0 %v715_v0  ;;  %526 = vmatprep.subr.bf16.mxu1 %v715_v0 }
  0x64   :  { %507 = vmatpush3.bf16.msra.mxu0 %v569_v11  ;;  %527 = vmatpush3.bf16.msra.mxu1 %v577_v16 }
  0x65   :  { %508 = vmatprep.subr.bf16.mxu0 %v715_v0  ;;  %528 = vmatprep.subr.bf16.mxu1 %v715_v0 }
  0x68   :  { %509 = vmatpush3.bf16.msra.mxu0 %v570_v13  ;;  %529 = vmatpush3.bf16.msra.mxu1 %v578_v17 }
  0x69   :  { %534 = vmatprep.subr.bf16.mxu0 %v715_v0 }
  0x6b   :  { %511 = vmatmul.mubr.bf16.vlgmr.msra.gmra.mrb[0].mxu0 %v78_v15 }
  0x6c   :  { %550 = vmatprep.mubr.msk.bf16.mxu0 %vm716_vm0, %v715_v0  ;;  %535 = vmatpush3.bf16.msra.mxu0 %v579_v18 }
  0x6d   :  { %536 = vmatprep.subr.bf16.mxu0 %v715_v0 }
  0x70   :  { %537 = vmatpush3.bf16.msra.mxu0 %v580_v19 }
  0x71   :  { %538 = vmatprep.subr.bf16.mxu0 %v715_v0 }
  0x74   :  { %539 = vmatpush3.bf16.msra.mxu0 %v581_v20 }
  0x75   :  { %540 = vmatprep.subr.bf16.mxu0 %v715_v0 }
  0x78   :  { %541 = vmatpush3.bf16.msra.mxu0 %v582_v21 }
  0x79   :  { %542 = vmatprep.subr.bf16.mxu0 %v715_v0 }
  0x7c   :  { %543 = vmatpush3.bf16.msra.mxu0 %v583_v22 }
  0x7d   :  { %544 = vmatprep.subr.bf16.mxu0 %v715_v0 }
  0x80   :  { %545 = vmatpush3.bf16.msra.mxu0 %v584_v23 }
  0x81   :  { %546 = vmatprep.subr.bf16.mxu0 %v715_v0 }
  0x84   :  { %547 = vmatpush3.bf16.msra.mxu0 %v585_v32 }
  0x85   :  { %548 = vmatprep.subr.bf16.mxu0 %v715_v0 }
  0x88   :  { %549 = vmatpush3.bf16.msra.mxu0 %v586_v33 }
 0x13e   :  { %v183_v25 = vpop.f32.mrb[0].mxu0 }
 0x13f   :  { %v184_v26 = vadd.f32 %v440_v24, %v183_v25  ;;  %v512_v27 = vpop.f32.mrb[1].mxu0 }
 0x140   :  { %v186_v28 = vpop.f32.mrb[2].mxu0 }
 0x141   :  { %v189_v29 = vmax.f32 %v184_v26, 0.0  ;;  %v513_v30 = vpop.f32.mrb[3].mxu0 }
 0x143   :  { %v190_v31 = vpack.c.bf16 %v189_v29, %v189_v29 }
 0x145   :  { %531 = vmatmul.mubr.bf16.vlgmr.msra.gmra.mrb[0].mxu1 %v190_v31 }
 0x218   :  { %v295_v35 = vpop.f32.mrb[0].mxu1 }
 0x219   :  { %v296_v36 = vadd.f32 %v449_v34, %v295_v35  ;;  %v532_v37 = vpop.f32.mrb[1].mxu1 }
 0x21a   :  { %v298_v38 = vpop.f32.mrb[2].mxu1 }
 0x21b   :  { %v301_v39 = vmax.f32 %v296_v36, 0.0  ;;  %v533_v40 = vpop.f32.mrb[3].mxu1 }
 0x21d   :  { %v302_v41 = vpack.c.bf16 %v301_v39, %v301_v39 }
 0x21f   :  { %551 = vmatmul.mubr.bf16.vlgmr.msra.gmra.mrb[4].mxu0 %v302_v41 }
 0x2f2   :  { %v407_v43 = vpop.f32.mrb[4].mxu0 }
 0x2f3   :  { %v408_v44 = vadd.f32 %v458_v42, %v407_v43  ;;  %v552_v45 = vpop.f32.mrb[5].mxu0 }
 0x2f4   :  { %v410_v46 = vpop.f32.mrb[6].mxu0 }
 0x2f5   :  { %413 = vmax.xlane.f32.xlu0 %v408_v44  ;;  %v553_v47 = vpop.f32.mrb[7].mxu0 }
 0x382   :  { %v414_v48 = vpop.xlane.xlu0 %413 }
 0x383   :  { %v415_v49 = vsub.f32 %v408_v44, %v414_v48 }
 0x385   :  { %v416_v50 = vmul.f32 1.442695, %v415_v49 }
 0x387   :  { %587 = vpow2.f32 %v416_v50 }
 0x391   :  { %v588_v51 = vpop.eup %587 }
 0x392   :  { %418 = vadd.xlane.f32.xlu0 %v588_v51 }
 0x41f   :  { %v419_v52 = vpop.xlane.xlu0 %418 }
 0x420   :  { %589 = vrcp.f32 %v419_v52 }
 0x42a   :  { %v590_v53 = vpop.eup %589 }
 0x42b   :  { %v421_v54 = vmul.f32 %v590_v53, %v588_v51 }
 0x42d   :  { %422 = vst [vmem:[#allocation10] sm:$0xff] %v421_v54 }
 0x42e   :  { %690 = shalt.err (!%p687_p8)
}
 0x42f   :  { %s691_s23 = scalar_lea.hbm %s861_s5, 128 }
 0x430   :  { %p692_p9 = scmp.ne.s32.totalorder %s861_s5, %s691_s23  ;;  %p695_p10 = scmp.lt.u32.totalorder %s691_s23, %s861_s5 }
 0x432   :  { %p697_p11 = pnand %p695_p10, %p692_p9 }
 0x434   :  { %700 = shalt.err (!%p697_p11)
}
 0x435   :  { %432 = dma.vmem_to_hbm [thread:$0]  %s430_s20, 128, %s861_s5, [#allocation4]  }
 0x436   :  { %707 = dma.done.wait [#allocation4], 128  }
 0x437   :  { %708 = vsyncadd [#allocation4], 4294967168 }
 0x438   :  { %436 = vsyncpa [#allocation3], 1 }
 0x439   :  { %437 = vsyncpa [#allocation6], 1 }
 0x43a   :  { %438 = vsyncpa [#allocation9], 1 }
 0x43b   :  { %439 = vsyncpa [#allocation4], 1 }

</bundles_post_ra>
